<compile_context>
chip_gen: v6e
topology: v6e:2x2x1
jax: 0.10.0
libtpu: 0.0.40
codegen_flags: <defaults>
</compile_context>

<pallas_src>
import functools

import jax
import jax.numpy as jnp
from jax import lax
from jax.experimental import pallas as pl
from jax.experimental.pallas import tpu as pltpu

# contract dim 1 of lhs with dim 1 of rhs, no batch dims (transpose-free matmuls)
_CONTRACT_LAST = (((1,), (1,)), ((), ()))
_MASK_VALUE = -1e30          # finite "-inf": keeps max()/exp() NaN-free
_VMEM_CAP = 48 << 20         # leave headroom under v7x's 64 MiB/TC


def _round_up(v, m):
    return (v + m - 1) // m * m


def _pow2_floor(v):
    return 1 << (int(v).bit_length() - 1)


def _pow2_ceil(v):
    return 1 << (int(v) - 1).bit_length()


def _qkv_proj_kernel(x_ref, wq_ref, wk_ref, wv_ref, q_ref, k_ref, v_ref, *, scale):
    """Project one seq tile: Q (pre-scaled by 1/sqrt(d_out)), K, V."""
    x = x_ref[...]
    q = lax.dot_general(x, wq_ref[...], _CONTRACT_LAST,
                        preferred_element_type=jnp.float32)
    q_ref[...] = (q * scale).astype(q_ref.dtype)
    k_ref[...] = lax.dot_general(x, wk_ref[...], _CONTRACT_LAST,
                                 preferred_element_type=jnp.float32).astype(k_ref.dtype)
    v_ref[...] = lax.dot_general(x, wv_ref[...], _CONTRACT_LAST,
                                 preferred_element_type=jnp.float32).astype(v_ref.dtype)


def _flash_attn_kernel(q_ref, k_ref, v_ref, bias_ref, o_ref,
                       m_scr, l_scr, acc_scr, *, need_mask):
    """Flash-style attention over pre-projected, pre-scaled Q and projected K/V tiles."""
    ki = pl.program_id(1)

    @pl.when(ki == 0)
    def _init():
        m_scr[...] = jnp.full(m_scr.shape, -jnp.inf, jnp.float32)
        l_scr[...] = jnp.zeros(l_scr.shape, jnp.float32)
        acc_scr[...] = jnp.zeros(acc_scr.shape, jnp.float32)

    # scores: contract the d_out axes of Q [tq, d] and K [tkv, d] -> [tq, tkv]
    s = lax.dot_general(q_ref[...], k_ref[...], _CONTRACT_LAST,
                        preferred_element_type=jnp.float32)
    if need_mask:
        s = s + bias_ref[...]          # (1, tkv) additive bias: 0 valid / -1e30 padded

    # online (streaming) softmax update
    m_prev = m_scr[...]
    m_new = jnp.maximum(m_prev, jnp.max(s, axis=-1, keepdims=True))
    alpha = jnp.exp(m_prev - m_new)
    p = jnp.exp(s - m_new)
    l_scr[...] = alpha * l_scr[...] + jnp.sum(p, axis=-1, keepdims=True)
    acc_scr[...] = alpha * acc_scr[...] + jnp.dot(
        p.astype(v_ref.dtype), v_ref[...], preferred_element_type=jnp.float32)
    m_scr[...] = m_new

    @pl.when(ki == pl.num_programs(1) - 1)
    def _finalize():
        inv_l = pl.reciprocal(l_scr[...], approx=True)   # EUP slot, ~free
        o_ref[...] = (acc_scr[...] * inv_l).astype(o_ref.dtype)


def vanilla_self_attention(x, w_q, w_k, w_v, *, tile_q=256, tile_kv=512,
                           compute_dtype=None):
    """x: [seq, d_in]; w_*: [d_out, d_in] (PyTorch Linear layout). Returns [seq, d_out]."""
    seq, d_in = x.shape
    d_out = w_q.shape[0]
    out_dtype = x.dtype
    c_dtype = jnp.dtype(compute_dtype) if compute_dtype is not None else jnp.dtype(out_dtype)
    c_item = c_dtype.itemsize
    o_item = jnp.dtype(out_dtype).itemsize

    # ---------------- tile plan ----------------
    sub = 16 if c_dtype == jnp.bfloat16 else 8
    d_in_p = _round_up(d_in, 128)
    d_out_p = _round_up(d_out, 128)

    # Query tile: power of two, >= sublane; guarantee n_q >= 2 (v7x megacore) when possible.
    tq = max(sub, _pow2_floor(min(tile_q, _pow2_ceil(max(seq, sub)))))
    if _round_up(seq, tq) // tq < 2 and tq > sub:
        tq //= 2
    seq_pq = _round_up(seq, tq)

    # KV tile: decoupled from tq; multiple of max(128, tq) so the scores / mask / stores
    # stay lane-dense and tq | tkv | seq_pk.
    kv_align = max(128, tq)
    tkv = max(kv_align, _round_up(min(tile_kv, _round_up(seq, kv_align)), kv_align))
    seq_pk = _round_up(seq, tkv)

    n_q = seq_pq // tq
    n_kv = seq_pk // tkv
    need_mask = seq_pk != seq

    # ---------------- padding / dtype (layout plumbing only) ----------------
    if (seq_pk, d_in_p) != (seq, d_in):
        x = jnp.pad(x, ((0, seq_pk - seq), (0, d_in_p - d_in)))
    if (d_out_p, d_in_p) != (d_out, d_in):
        pad_w = ((0, d_out_p - d_out), (0, d_in_p - d_in))
        w_q, w_k, w_v = (jnp.pad(w, pad_w) for w in (w_q, w_k, w_v))
    if c_dtype != x.dtype:
        x, w_q, w_k, w_v = (a.astype(c_dtype) for a in (x, w_q, w_k, w_v))

    # ---------------- stage 1: QKV projection (runs once) ----------------
    scale = 1.0 / float(d_out) ** 0.5        # original d_out (== keys.shape[-1] in torch)
    t_proj = tkv                              # divides seq_pk
    n_proj = seq_pk // t_proj

    proj_vmem = (2 * t_proj * d_in_p * c_item            # x tile (double-buffered)
                 + 3 * d_out_p * d_in_p * c_item         # weights (single-buffered)
                 + 2 * 3 * t_proj * d_out_p * c_item)    # q/k/v output tiles
    proj_limit = int(min(max(2 * proj_vmem, 16 << 20), _VMEM_CAP))

    # TODO(synk): for very wide models, also tile the d_in reduction of the projection
    # instead of keeping the full (d_out_p, d_in_p) weights resident in VMEM.
    w_spec = pl.BlockSpec((d_out_p, d_in_p), lambda i: (0, 0),
                          pipeline_mode=pl.Buffered(1))   # block index never changes
    qkv_struct = jax.ShapeDtypeStruct((seq_pk, d_out_p), c_dtype)

    q, k, v = pl.pallas_call(
        functools.partial(_qkv_proj_kernel, scale=scale),
        out_shape=(qkv_struct, qkv_struct, qkv_struct),
        grid_spec=pltpu.PrefetchScalarGridSpec(
            num_scalar_prefetch=0,
            grid=(n_proj,),
            in_specs=[pl.BlockSpec((t_proj, d_in_p), lambda i: (i, 0)),
                      w_spec, w_spec, w_spec],
            out_specs=(pl.BlockSpec((t_proj, d_out_p), lambda i: (i, 0)),
                       pl.BlockSpec((t_proj, d_out_p), lambda i: (i, 0)),
                       pl.BlockSpec((t_proj, d_out_p), lambda i: (i, 0))),
        ),
        compiler_params=pltpu.CompilerParams(
            dimension_semantics=("parallel",),
            vmem_limit_bytes=proj_limit),
        cost_estimate=pl.CostEstimate(
            flops=int(6 * seq_pk * d_in_p * d_out_p),
            transcendentals=0,
            bytes_accessed=int(c_item * (seq_pk * d_in_p + 3 * d_out_p * d_in_p
                                         + 3 * seq_pk * d_out_p))),
    )(x, w_q, w_k, w_v)

    # ---------------- stage 2: flash attention over projected tiles ----------------
    # Additive key-padding bias row (0 for real keys, -1e30 for padded keys).
    kv_bias = jnp.where(
        lax.broadcasted_iota(jnp.int32, (1, seq_pk), 1) < seq,
        0.0, _MASK_VALUE).astype(jnp.float32)

    attn_vmem = (2 * tq * d_out_p * c_item               # q tile
                 + 2 * 2 * tkv * d_out_p * c_item        # k / v tiles
                 + 2 * tkv * 4                           # bias row
                 + 2 * tq * d_out_p * o_item             # output tile
                 + tq * d_out_p * 4                      # f32 accumulator
                 + 2 * tq * 128 * 4)                     # m / l (lane-padded)
    attn_limit = int(min(max(2 * attn_vmem, 16 << 20), _VMEM_CAP))

    out = pl.pallas_call(
        functools.partial(_flash_attn_kernel, need_mask=need_mask),
        out_shape=jax.ShapeDtypeStruct((seq_pq, d_out_p), out_dtype),
        grid_spec=pltpu.PrefetchScalarGridSpec(
            num_scalar_prefetch=0,
            grid=(n_q, n_kv),
            in_specs=[
                pl.BlockSpec((tq, d_out_p), lambda qi, ki: (qi, 0)),   # Q (pre-scaled)
                pl.BlockSpec((tkv, d_out_p), lambda qi, ki: (ki, 0)),  # K
                pl.BlockSpec((tkv, d_out_p), lambda qi, ki: (ki, 0)),  # V
                pl.BlockSpec((1, tkv), lambda qi, ki: (0, ki)),        # key-padding bias
            ],
            out_specs=pl.BlockSpec((tq, d_out_p), lambda qi, ki: (qi, 0)),
            scratch_shapes=[
                pltpu.VMEM((tq, 1), jnp.float32),        # running max m
                pltpu.VMEM((tq, 1), jnp.float32),        # running denom l
                pltpu.VMEM((tq, d_out_p), jnp.float32),  # f32 output accumulator
            ],
        ),
        compiler_params=pltpu.CompilerParams(
            dimension_semantics=("parallel", "arbitrary"),
            vmem_limit_bytes=attn_limit),
        cost_estimate=pl.CostEstimate(
            flops=int(4 * seq_pq * seq_pk * d_out_p),
            transcendentals=int(seq_pq * seq_pk + (n_kv + 1) * seq_pq),
            bytes_accessed=int(c_item * (seq_pq + 2 * n_q * seq_pk) * d_out_p
                               + 4 * n_q * seq_pk
                               + o_item * seq_pq * d_out_p)),
    )(q, k, v, kv_bias)

    return out[:seq, :d_out]


def reference(x, w_q, w_k, w_v):
    q = x @ w_q.T
    k = x @ w_k.T
    v = x @ w_v.T
    scores = q @ k.T / jnp.sqrt(jnp.float32(k.shape[-1]))
    return jax.nn.softmax(scores, axis=-1) @ v


if __name__ == "__main__":
    # Shapes implied by the module: seq=8, d_in=16, d_out=32.
    seq, d_in, d_out = 8, 16, 32

    key = jax.random.PRNGKey(0)
    kx, kq, kk, kv_ = jax.random.split(key, 4)

    x = jax.random.normal(kx, (seq, d_in), dtype=jnp.float32)
    bound = 1.0 / (d_in ** 0.5)
    w_q = jax.random.uniform(kq, (d_out, d_in), jnp.float32, -bound, bound)
    w_k = jax.random.uniform(kk, (d_out, d_in), jnp.float32, -bound, bound)
    w_v = jax.random.uniform(kv_, (d_out, d_in), jnp.float32, -bound, bound)

    out = jax.block_until_ready(vanilla_self_attention(x, w_q, w_k, w_v))
    ref = reference(x, w_q, w_k, w_v)
    assert out.shape == (seq, d_out)
    assert jnp.allclose(out, ref, atol=5e-3, rtol=5e-3), "mismatch vs reference (small)"

    # Second (still small) config exercising key padding + multi-tile grid.
    seq2, d_in2, d_out2 = 96, 40, 72
    k2 = jax.random.split(jax.random.PRNGKey(0), 4)
    x2 = jax.random.normal(k2[0], (seq2, d_in2), dtype=jnp.float32)
    b2 = 1.0 / (d_in2 ** 0.5)
    wq2 = jax.random.uniform(k2[1], (d_out2, d_in2), jnp.float32, -b2, b2)
    wk2 = jax.random.uniform(k2[2], (d_out2, d_in2), jnp.float32, -b2, b2)
    wv2 = jax.random.uniform(k2[3], (d_out2, d_in2), jnp.float32, -b2, b2)
    out2 = jax.block_until_ready(
        vanilla_self_attention(x2, wq2, wk2, wv2, tile_q=32, tile_kv=64))
    ref2 = reference(x2, wq2, wk2, wv2)
    assert out2.shape == (seq2, d_out2)
    assert jnp.allclose(out2, ref2, atol=5e-3, rtol=5e-3), "mismatch vs reference (padded)"

    print("KERNEL_OK")
</pallas_src>

<mosaic_0001>
module attributes {stable_mosaic.version = 11 : i64} {
  func.func @_qkv_proj_kernel(%arg0: i32, %arg1: memref<128x128xf32, #tpu.memory_space<vmem>>, %arg2: memref<128x128xf32, #tpu.memory_space<vmem>>, %arg3: memref<128x128xf32, #tpu.memory_space<vmem>>, %arg4: memref<128x128xf32, #tpu.memory_space<vmem>>, %arg5: memref<128x128xf32, #tpu.memory_space<vmem>>, %arg6: memref<128x128xf32, #tpu.memory_space<vmem>>, %arg7: memref<128x128xf32, #tpu.memory_space<vmem>>) attributes {dimension_semantics = [#tpu.dimension_semantics<parallel>], iteration_bounds = array<i64: 1>, scalar_prefetch = 0 : i64, scratch_operands = 0 : i64, tpu.core_type = #tpu.core_type<tc>, window_params = [{transform_indices = @transform_0, window_bounds = array<i64: 128, 128>}, {pipeline_mode = #tpu.pipeline_mode<synchronous>, transform_indices = @transform_1, window_bounds = array<i64: 128, 128>}, {pipeline_mode = #tpu.pipeline_mode<synchronous>, transform_indices = @transform_2, window_bounds = array<i64: 128, 128>}, {pipeline_mode = #tpu.pipeline_mode<synchronous>, transform_indices = @transform_3, window_bounds = array<i64: 128, 128>}, {transform_indices = @transform_4, window_bounds = array<i64: 128, 128>}, {transform_indices = @transform_5, window_bounds = array<i64: 128, 128>}, {transform_indices = @transform_6, window_bounds = array<i64: 128, 128>}]} {
    %c0 = arith.constant 0 : index
    %c0_0 = arith.constant 0 : index
    %0 = vector.load %arg1[%c0, %c0_0] : memref<128x128xf32, #tpu.memory_space<vmem>>, vector<128x128xf32>
    %c0_1 = arith.constant 0 : index
    %c0_2 = arith.constant 0 : index
    %1 = vector.load %arg2[%c0_1, %c0_2] : memref<128x128xf32, #tpu.memory_space<vmem>>, vector<128x128xf32>
    %cst = arith.constant dense<0.000000e+00> : vector<128x128xf32>
    %2 = tpu.matmul %0, %1, %cst {dimension_numbers = #tpu.dot_dimension_numbers<[1], [1], [0], [0], [0, 0, 1, 0], [], []>} : vector<128x128xf32>, vector<128x128xf32>, vector<128x128xf32> -> vector<128x128xf32>
    %cst_3 = arith.constant 0.176776692 : f32
    %3 = vector.broadcast %cst_3 : f32 to vector<128x128xf32>
    %4 = arith.mulf %2, %3 : vector<128x128xf32>
    %c0_4 = arith.constant 0 : index
    %c0_5 = arith.constant 0 : index
    %5 = vector.load %arg5[%c0_4, %c0_5] : memref<128x128xf32, #tpu.memory_space<vmem>>, vector<128x128xf32>
    tpu.vector_store %arg5[%c0_4, %c0_5], %4 {strides = array<i32>} : memref<128x128xf32, #tpu.memory_space<vmem>>, vector<128x128xf32>,
    %c0_6 = arith.constant 0 : index
    %c0_7 = arith.constant 0 : index
    %6 = vector.load %arg3[%c0_6, %c0_7] : memref<128x128xf32, #tpu.memory_space<vmem>>, vector<128x128xf32>
    %cst_8 = arith.constant dense<0.000000e+00> : vector<128x128xf32>
    %7 = tpu.matmul %0, %6, %cst_8 {dimension_numbers = #tpu.dot_dimension_numbers<[1], [1], [0], [0], [0, 0, 1, 0], [], []>} : vector<128x128xf32>, vector<128x128xf32>, vector<128x128xf32> -> vector<128x128xf32>
    %c0_9 = arith.constant 0 : index
    %c0_10 = arith.constant 0 : index
    %8 = vector.load %arg6[%c0_9, %c0_10] : memref<128x128xf32, #tpu.memory_space<vmem>>, vector<128x128xf32>
    tpu.vector_store %arg6[%c0_9, %c0_10], %7 {strides = array<i32>} : memref<128x128xf32, #tpu.memory_space<vmem>>, vector<128x128xf32>,
    %c0_11 = arith.constant 0 : index
    %c0_12 = arith.constant 0 : index
    %9 = vector.load %arg4[%c0_11, %c0_12] : memref<128x128xf32, #tpu.memory_space<vmem>>, vector<128x128xf32>
    %cst_13 = arith.constant dense<0.000000e+00> : vector<128x128xf32>
    %10 = tpu.matmul %0, %9, %cst_13 {dimension_numbers = #tpu.dot_dimension_numbers<[1], [1], [0], [0], [0, 0, 1, 0], [], []>} : vector<128x128xf32>, vector<128x128xf32>, vector<128x128xf32> -> vector<128x128xf32>
    %c0_14 = arith.constant 0 : index
    %c0_15 = arith.constant 0 : index
    %11 = vector.load %arg7[%c0_14, %c0_15] : memref<128x128xf32, #tpu.memory_space<vmem>>, vector<128x128xf32>
    tpu.vector_store %arg7[%c0_14, %c0_15], %10 {strides = array<i32>} : memref<128x128xf32, #tpu.memory_space<vmem>>, vector<128x128xf32>,
    return
  }
  func.func @transform_0(%arg0: i32) -> (i32, i32) {
    %c0_i32 = arith.constant 0 : i32
    %c0_i32_0 = arith.constant 0 : i32
    return %arg0, %c0_i32 : i32, i32
  }
  func.func @transform_1(%arg0: i32) -> (i32, i32) {
    %c0_i32 = arith.constant 0 : i32
    %c0_i32_0 = arith.constant 0 : i32
    %c0_i32_1 = arith.constant 0 : i32
    return %c0_i32, %c0_i32_0 : i32, i32
  }
  func.func @transform_2(%arg0: i32) -> (i32, i32) {
    %c0_i32 = arith.constant 0 : i32
    %c0_i32_0 = arith.constant 0 : i32
    %c0_i32_1 = arith.constant 0 : i32
    return %c0_i32, %c0_i32_0 : i32, i32
  }
  func.func @transform_3(%arg0: i32) -> (i32, i32) {
    %c0_i32 = arith.constant 0 : i32
    %c0_i32_0 = arith.constant 0 : i32
    %c0_i32_1 = arith.constant 0 : i32
    return %c0_i32, %c0_i32_0 : i32, i32
  }
  func.func @transform_4(%arg0: i32) -> (i32, i32) {
    %c0_i32 = arith.constant 0 : i32
    %c0_i32_0 = arith.constant 0 : i32
    return %arg0, %c0_i32 : i32, i32
  }
  func.func @transform_5(%arg0: i32) -> (i32, i32) {
    %c0_i32 = arith.constant 0 : i32
    %c0_i32_0 = arith.constant 0 : i32
    return %arg0, %c0_i32 : i32, i32
  }
  func.func @transform_6(%arg0: i32) -> (i32, i32) {
    %c0_i32 = arith.constant 0 : i32
    %c0_i32_0 = arith.constant 0 : i32
    return %arg0, %c0_i32 : i32, i32
  }
}

</mosaic_0001>

<bundles_post_ra>
// kernel: tpu_custom_call.1
= control target key start
LH: loop header
LB: loop body
LE: loop exit
PB: predicated region body
PF: predicated region fallthrough
CT: control target
= control target key end

     0   :  { %12 = vsyncpa [#allocation3], 0  ;;  %s1306_s0 = inlined_call_operand.hbm [shape: f32[128,128], index: 0, kind: input, shape index: {}]   ;;  %s1307_s1 = inlined_call_operand.hbm [shape: f32[128,128], index: 1, kind: input, shape index: {}]   ;;  %s1308_s2 = inlined_call_operand.hbm [shape: f32[128,128], index: 2, kind: input, shape index: {}]   ;;  %s1309_s3 = inlined_call_operand.hbm [shape: f32[128,128], index: 3, kind: input, shape index: {}]   ;;  %s1310_s4 = inlined_call_operand.hbm [shape: f32[128,128], index: 4, kind: output, shape index: {0}]   ;;  %s1311_s5 = inlined_call_operand.hbm [shape: f32[128,128], index: 5, kind: output, shape index: {1}]   ;;  %s1312_s6 = inlined_call_operand.hbm [shape: f32[128,128], index: 6, kind: output, shape index: {2}]  }
   0x1   :  { %13 = vsyncpa [#allocation6], 0 }
   0x2   :  { %14 = vsyncpa [#allocation9], 0 }
   0x3   :  { %15 = vsyncpa [#allocation4], 0 }
   0x4   :  { %16 = vsyncpa [#allocation12], 0  ;;  %s1145_s21 = smov [#allocation5]   ;;  %s1146_s23 = smov [#allocation2]  }
   0x5   :  { %s34_s22 = sshll.u32 %s1145_s21, 4  ;;  %s22_s24 = sshll.u32 %s1146_s23, 4  ;;  %s35_s22 = int_to_ptr.vmem [resolvable:$true] %s34_s22  ;;  %s23_s24 = int_to_ptr.vmem [resolvable:$true] %s22_s24 }
   0x6   :  { %s1003_s25 = scalar_lea.vmem %s35_s22, 2048  ;;  %p1008_p1 = scmp.lt.s32.totalorder %s35_s22, %s35_s22 }
   0x7   :  { %p1004_p0 = scmp.ne.s32.totalorder %s35_s22, %s1003_s25  ;;  %p1009_p2 = scmp.lt.s32.totalorder %s1003_s25, %s1003_s25 }
   0x9   :  { %p1010_p3 = por %p1009_p2, %p1008_p1 }
   0xb   :  { %p1011_p4 = pnand %p1010_p3, %p1004_p0 }
   0xd   :  { %1014 = shalt.err (!%p1011_p4)
}
   0xe   :  { %s1147_s26 = smov 128   ;;  %s1148_s27 = smov 8  }
   0xf   :  { %40 = dma.hbm_to_vmem [thread:$0]  %s1307_s1, 2048, %s35_s22, [#allocation6], %s1147_s26, %s1147_s26, %s1148_s27  }
  0x10   :  { %s1023_s30 = scalar_lea.vmem %s23_s24, 2048  ;;  %p1028_p6 = scmp.lt.s32.totalorder %s23_s24, %s23_s24 }
  0x11   :  { %p1024_p5 = scmp.ne.s32.totalorder %s23_s24, %s1023_s30  ;;  %p1029_p7 = scmp.lt.s32.totalorder %s1023_s30, %s1023_s30 }
  0x13   :  { %p1030_p8 = por %p1029_p7, %p1028_p6 }
  0x15   :  { %p1031_p9 = pnand %p1030_p8, %p1024_p5 }
  0x17   :  { %1034 = shalt.err (!%p1031_p9)
}
  0x18   :  { %28 = dma.hbm_to_vmem [thread:$0]  %s1306_s0, 2048, %s23_s24, [#allocation3], %s1147_s26, %s1147_s26, %s1148_s27  }
  0x19   :  { %s1149_s9 = smov [#allocation7]   ;;  %s1150_s11 = smov [#allocation8]  }
  0x1a   :  { %s46_s10 = sshll.u32 %s1149_s9, 4  ;;  %s58_s12 = sshll.u32 %s1150_s11, 4  ;;  %s47_s10 = int_to_ptr.vmem [resolvable:$true] %s46_s10  ;;  %s59_s12 = int_to_ptr.vmem [resolvable:$true] %s58_s12 }
  0x1b   :  { %s1043_s1 = scalar_lea.vmem %s47_s10, 2048  ;;  %p1048_p11 = scmp.lt.s32.totalorder %s47_s10, %s47_s10 }
  0x1c   :  { %p1044_p10 = scmp.ne.s32.totalorder %s47_s10, %s1043_s1  ;;  %p1049_p12 = scmp.lt.s32.totalorder %s1043_s1, %s1043_s1 }
  0x1e   :  { %p1050_p13 = por %p1049_p12, %p1048_p11 }
  0x20   :  { %p1051_p0 = pnand %p1050_p13, %p1044_p10 }
  0x22   :  { %1054 = shalt.err (!%p1051_p0)
}
  0x23   :  { %52 = dma.hbm_to_vmem [thread:$0]  %s1308_s2, 2048, %s47_s10, [#allocation6], %s1147_s26, %s1147_s26, %s1148_s27  }
  0x24   :  { %s1063_s0 = scalar_lea.vmem %s59_s12, 2048  ;;  %p1068_p2 = scmp.lt.s32.totalorder %s59_s12, %s59_s12 }
  0x25   :  { %p1064_p1 = scmp.ne.s32.totalorder %s59_s12, %s1063_s0  ;;  %p1069_p3 = scmp.lt.s32.totalorder %s1063_s0, %s1063_s0 }
  0x27   :  { %p1070_p4 = por %p1069_p3, %p1068_p2 }
  0x29   :  { %p1071_p5 = pnand %p1070_p4, %p1064_p1 }
  0x2b   :  { %1074 = shalt.err (!%p1071_p5)
}
  0x2c   :  { %64 = dma.hbm_to_vmem [thread:$0]  %s1309_s3, 2048, %s59_s12, [#allocation9], %s1147_s26, %s1147_s26, %s1148_s27  }
  0x2d   :  { %1135 = dma.done.wait [#allocation3], 2048  }
  0x2e   :  { %1136 = vsyncadd [#allocation3], 4294965248 }
  0x2f   :  { %1137 = dma.done.wait [#allocation6], 4096  }
  0x30   :  { %1138 = vsyncadd [#allocation6], 4294963200 }
  0x31   :  { %1139 = dma.done.wait [#allocation9], 2048  }
  0x32   :  { %1140 = vsyncadd [#allocation9], 4294965248  ;;  %v108_v0 = vld [vmem:[#allocation5 + $0x78] sm:$0xff]  ;;  %v107_v2 = vld [vmem:[#allocation5 + $0x70] sm:$0xff]  ;;  %s1151_s2 = smov [#allocation11]   ;;  %s1152_s17 = smov [#allocation10]  }
  0x33   :  { %v301_v1 = vld [vmem:[#allocation7 + $0x78] sm:$0xff]  ;;  %786 = vmatprep.subr.mxu0 %v108_v0  ;;  %v300_v3 = vld [vmem:[#allocation7 + $0x70] sm:$0xff]  ;;  %v106_v4 = vld [vmem:[#allocation5 + $0x68] sm:$0xff]  ;;  %s657_s3 = sshll.u32 %s1151_s2, 4  ;;  %s645_s18 = sshll.u32 %s1152_s17, 4  ;;  %s658_s3 = int_to_ptr.vmem [resolvable:$true] %s657_s3  ;;  %s646_s18 = int_to_ptr.vmem [resolvable:$true] %s645_s18 }
  0x34   :  { %842 = vmatprep.subr.mxu1 %v301_v1  ;;  %787 = vmatpush3.xpose.msra.mxu0 %v108_v0  ;;  %v299_v5 = vld [vmem:[#allocation7 + $0x68] sm:$0xff]  ;;  %v105_v6 = vld [vmem:[#allocation5 + $0x60] sm:$0xff]  ;;  %v104_v9 = vld [vmem:[#allocation5 + $0x58] sm:$0xff]  ;;  %s1075_s19 = scalar_lea.vmem %s658_s3, 2048  ;;  %p1080_p7 = scmp.lt.s32.totalorder %s658_s3, %s658_s3 }
  0x35   :  { %843 = vmatpush3.xpose.msra.mxu1 %v301_v1  ;;  %788 = vmatprep.subr.mxu0 %v107_v2  ;;  %v298_v7 = vld [vmem:[#allocation7 + $0x60] sm:$0xff]  ;;  %v297_v10 = vld [vmem:[#allocation7 + $0x58] sm:$0xff]  ;;  %v103_v11 = vld [vmem:[#allocation5 + $0x50] sm:$0xff]  ;;  %p1076_p6 = scmp.ne.s32.totalorder %s658_s3, %s1075_s19  ;;  %p1081_p8 = scmp.lt.s32.totalorder %s1075_s19, %s1075_s19 }
  0x36   :  { %844 = vmatprep.subr.mxu1 %v300_v3  ;;  %v1213_v8 = vld [vmem:[#allocation2] sm:$0xff]  ;;  %v296_v12 = vld [vmem:[#allocation7 + $0x50] sm:$0xff]  ;;  %v102_v13 = vld [vmem:[#allocation5 + $0x48] sm:$0xff] }
  0x37   :  { %818 = vmatprep.mubr.f32.mxu0 %v1213_v8  ;;  %874 = vmatprep.mubr.f32.mxu1 %v1213_v8  ;;  %v295_v14 = vld [vmem:[#allocation7 + $0x48] sm:$0xff]  ;;  %v101_v15 = vld [vmem:[#allocation5 + $0x40] sm:$0xff]  ;;  %v100_v17 = vld [vmem:[#allocation5 + $0x38] sm:$0xff]  ;;  %p1082_p9 = por %p1081_p8, %p1080_p7 }
  0x38   :  { %789 = vmatpush3.xpose.msra.mxu0 %v107_v2  ;;  %v294_v16 = vld [vmem:[#allocation7 + $0x40] sm:$0xff]  ;;  %v293_v18 = vld [vmem:[#allocation7 + $0x38] sm:$0xff]  ;;  %v99_v19 = vld [vmem:[#allocation5 + $0x30] sm:$0xff] }
  0x39   :  { %845 = vmatpush3.xpose.msra.mxu1 %v300_v3  ;;  %790 = vmatprep.subr.mxu0 %v106_v4  ;;  %v292_v20 = vld [vmem:[#allocation7 + $0x30] sm:$0xff]  ;;  %v98_v21 = vld [vmem:[#allocation5 + $0x28] sm:$0xff]  ;;  %v97_v23 = vld [vmem:[#allocation5 + $0x20] sm:$0xff]  ;;  %p1083_p10 = pnand %p1082_p9, %p1076_p6 }
  0x3a   :  { %846 = vmatprep.subr.mxu1 %v299_v5  ;;  %v291_v22 = vld [vmem:[#allocation7 + $0x28] sm:$0xff]  ;;  %v290_v24 = vld [vmem:[#allocation7 + $0x20] sm:$0xff]  ;;  %v96_v25 = vld [vmem:[#allocation5 + $0x18] sm:$0xff] }
  0x3b   :  { %v289_v26 = vld [vmem:[#allocation7 + $0x18] sm:$0xff]  ;;  %v95_v27 = vld [vmem:[#allocation5 + $0x10] sm:$0xff]  ;;  %v94_v29 = vld [vmem:[#allocation5 + $0x8] sm:$0xff] }
  0x3c   :  { %791 = vmatpush3.xpose.msra.mxu0 %v106_v4  ;;  %v288_v28 = vld [vmem:[#allocation7 + $0x10] sm:$0xff]  ;;  %v287_v30 = vld [vmem:[#allocation7 + $0x8] sm:$0xff]  ;;  %v93_v31 = vld [vmem:[#allocation5] sm:$0xff] }
  0x3d   :  { %847 = vmatpush3.xpose.msra.mxu1 %v299_v5  ;;  %792 = vmatprep.subr.mxu0 %v105_v6  ;;  %v286_v32 = vld [vmem:[#allocation7] sm:$0xff]  ;;  %v478_v33 = vld [vmem:[#allocation8 + $0x78] sm:$0xff]  ;;  %v1217_v34 = vld [vmem:[#allocation2 + $0x8] sm:$0xff] }
  0x3e   :  { %848 = vmatprep.subr.mxu1 %v298_v7  ;;  %v477_v35 = vld [vmem:[#allocation8 + $0x70] sm:$0xff]  ;;  %v1223_v37 = vld [vmem:[#allocation2 + $0x18] sm:$0xff]  ;;  %v476_v38 = vld [vmem:[#allocation8 + $0x68] sm:$0xff] }
  0x3f   :  { %v1221_v36 = vld [vmem:[#allocation2 + $0x10] sm:$0xff]  ;;  %v1229_v39 = vld [vmem:[#allocation2 + $0x20] sm:$0xff]  ;;  %v1231_v40 = vld [vmem:[#allocation2 + $0x28] sm:$0xff] }
  0x40   :  { %793 = vmatpush3.xpose.msra.mxu0 %v105_v6  ;;  %v475_v41 = vld [vmem:[#allocation8 + $0x60] sm:$0xff]  ;;  %v1237_v42 = vld [vmem:[#allocation2 + $0x30] sm:$0xff]  ;;  %v1239_v43 = vld [vmem:[#allocation2 + $0x38] sm:$0xff] }
  0x41   :  { %849 = vmatpush3.xpose.msra.mxu1 %v298_v7  ;;  %794 = vmatprep.subr.mxu0 %v104_v9  ;;  %v474_v44 = vld [vmem:[#allocation8 + $0x58] sm:$0xff]  ;;  %v85_v45 = vld [vmem:[#allocation2 + $0x40] sm:$0xff]  ;;  %v1245_v46 = vld [vmem:[#allocation2 + $0x48] sm:$0xff] }
  0x42   :  { %850 = vmatprep.subr.mxu1 %v297_v10  ;;  %v473_v47 = vld [vmem:[#allocation8 + $0x50] sm:$0xff]  ;;  %v1251_v49 = vld [vmem:[#allocation2 + $0x58] sm:$0xff]  ;;  %v472_v50 = vld [vmem:[#allocation8 + $0x48] sm:$0xff] }
  0x43   :  { %v1249_v48 = vld [vmem:[#allocation2 + $0x50] sm:$0xff]  ;;  %v1257_v51 = vld [vmem:[#allocation2 + $0x60] sm:$0xff]  ;;  %v1259_v52 = vld [vmem:[#allocation2 + $0x68] sm:$0xff] }
  0x44   :  { %795 = vmatpush3.xpose.msra.mxu0 %v104_v9  ;;  %v471_v53 = vld [vmem:[#allocation8 + $0x40] sm:$0xff]  ;;  %v1265_v54 = vld [vmem:[#allocation2 + $0x70] sm:$0xff]  ;;  %v1267_v55 = vld [vmem:[#allocation2 + $0x78] sm:$0xff] }
  0x45   :  { %851 = vmatpush3.xpose.msra.mxu1 %v297_v10  ;;  %796 = vmatprep.subr.mxu0 %v103_v11  ;;  %v470_v56 = vld [vmem:[#allocation8 + $0x38] sm:$0xff]  ;;  %v469_v57 = vld [vmem:[#allocation8 + $0x30] sm:$0xff]  ;;  %v468_v58 = vld [vmem:[#allocation8 + $0x28] sm:$0xff] }
  0x46   :  { %852 = vmatprep.subr.mxu1 %v296_v12  ;;  %v467_v59 = vld [vmem:[#allocation8 + $0x20] sm:$0xff]  ;;  %v466_v60 = vld [vmem:[#allocation8 + $0x18] sm:$0xff]  ;;  %v465_v61 = vld [vmem:[#allocation8 + $0x10] sm:$0xff] }
  0x47   :  { %v464_v62 = vld [vmem:[#allocation8 + $0x8] sm:$0xff]  ;;  %v463_v63 = vld [vmem:[#allocation8] sm:$0xff] }
  0x48   :  { %797 = vmatpush3.xpose.msra.mxu0 %v103_v11 }
  0x49   :  { %853 = vmatpush3.xpose.msra.mxu1 %v296_v12  ;;  %798 = vmatprep.subr.mxu0 %v102_v13 }
  0x4a   :  { %854 = vmatprep.subr.mxu1 %v295_v14 }
  0x4c   :  { %799 = vmatpush3.xpose.msra.mxu0 %v102_v13 }
  0x4d   :  { %855 = vmatpush3.xpose.msra.mxu1 %v295_v14  ;;  %800 = vmatprep.subr.mxu0 %v101_v15 }
  0x4e   :  { %856 = vmatprep.subr.mxu1 %v294_v16 }
  0x50   :  { %801 = vmatpush3.xpose.msra.mxu0 %v101_v15 }
  0x51   :  { %857 = vmatpush3.xpose.msra.mxu1 %v294_v16  ;;  %802 = vmatprep.subr.mxu0 %v100_v17 }
  0x52   :  { %858 = vmatprep.subr.mxu1 %v293_v18 }
  0x54   :  { %803 = vmatpush3.xpose.msra.mxu0 %v100_v17 }
  0x55   :  { %859 = vmatpush3.xpose.msra.mxu1 %v293_v18  ;;  %804 = vmatprep.subr.mxu0 %v99_v19 }
  0x56   :  { %860 = vmatprep.subr.mxu1 %v292_v20 }
  0x58   :  { %805 = vmatpush3.xpose.msra.mxu0 %v99_v19 }
  0x59   :  { %861 = vmatpush3.xpose.msra.mxu1 %v292_v20  ;;  %806 = vmatprep.subr.mxu0 %v98_v21 }
  0x5a   :  { %862 = vmatprep.subr.mxu1 %v291_v22 }
  0x5c   :  { %807 = vmatpush3.xpose.msra.mxu0 %v98_v21 }
  0x5d   :  { %863 = vmatpush3.xpose.msra.mxu1 %v291_v22  ;;  %808 = vmatprep.subr.mxu0 %v97_v23 }
  0x5e   :  { %864 = vmatprep.subr.mxu1 %v290_v24 }
  0x60   :  { %809 = vmatpush3.xpose.msra.mxu0 %v97_v23 }
  0x61   :  { %865 = vmatpush3.xpose.msra.mxu1 %v290_v24  ;;  %810 = vmatprep.subr.mxu0 %v96_v25 }
  0x62   :  { %866 = vmatprep.subr.mxu1 %v289_v26 }
  0x64   :  { %811 = vmatpush3.xpose.msra.mxu0 %v96_v25 }
  0x65   :  { %867 = vmatpush3.xpose.msra.mxu1 %v289_v26  ;;  %812 = vmatprep.subr.mxu0 %v95_v27 }
  0x66   :  { %868 = vmatprep.subr.mxu1 %v288_v28 }
  0x68   :  { %813 = vmatpush3.xpose.msra.mxu0 %v95_v27 }
  0x69   :  { %869 = vmatpush3.xpose.msra.mxu1 %v288_v28  ;;  %814 = vmatprep.subr.mxu0 %v94_v29 }
  0x6a   :  { %870 = vmatprep.subr.mxu1 %v287_v30 }
  0x6c   :  { %815 = vmatpush3.xpose.msra.mxu0 %v94_v29 }
  0x6d   :  { %871 = vmatpush3.xpose.msra.mxu1 %v287_v30  ;;  %816 = vmatprep.subr.mxu0 %v93_v31 }
  0x6e   :  { %872 = vmatprep.subr.mxu1 %v286_v32 }
  0x70   :  { %817 = vmatpush3.xpose.msra.mxu0 %v93_v31 }
  0x71   :  { %873 = vmatpush3.xpose.msra.mxu1 %v286_v32  ;;  %898 = vmatprep.subr.mxu0 %v478_v33 }
  0x72   :  { %954 = vmatprep.subr.mxu1 %v478_v33 }
  0x73   :  { %819 = vmatmul.mubr.f32.vlgmr.msra.gmra.mxu0 %v1217_v34 }
  0x74   :  { %875 = vmatmul.mubr.f32.vlgmr.msra.gmra.mxu1 %v1217_v34  ;;  %899 = vmatpush3.xpose.msra.mxu0 %v478_v33 }
  0x75   :  { %970 = vmatpush3.xpose.msra.mxu1 %v478_v33  ;;  %900 = vmatprep.subr.mxu0 %v477_v35 }
  0x76   :  { %955 = vmatprep.subr.mxu1 %v477_v35  ;;  %821 = vmatprep.mubr.f32.mxu0 %v1221_v36 }
  0x77   :  { %877 = vmatprep.mubr.f32.mxu1 %v1221_v36  ;;  %822 = vmatmul.mubr.f32.gmra.mxu0 %v1223_v37 }
  0x78   :  { %878 = vmatmul.mubr.f32.gmra.mxu1 %v1223_v37  ;;  %901 = vmatpush3.xpose.msra.mxu0 %v477_v35 }
  0x79   :  { %971 = vmatpush3.xpose.msra.mxu1 %v477_v35  ;;  %902 = vmatprep.subr.mxu0 %v476_v38 }
  0x7a   :  { %956 = vmatprep.subr.mxu1 %v476_v38  ;;  %824 = vmatprep.mubr.f32.mxu0 %v1229_v39 }
  0x7b   :  { %880 = vmatprep.mubr.f32.mxu1 %v1229_v39  ;;  %825 = vmatmul.mubr.f32.gmra.mxu0 %v1231_v40 }
  0x7c   :  { %881 = vmatmul.mubr.f32.gmra.mxu1 %v1231_v40  ;;  %903 = vmatpush3.xpose.msra.mxu0 %v476_v38 }
  0x7d   :  { %972 = vmatpush3.xpose.msra.mxu1 %v476_v38  ;;  %904 = vmatprep.subr.mxu0 %v475_v41 }
  0x7e   :  { %957 = vmatprep.subr.mxu1 %v475_v41  ;;  %827 = vmatprep.mubr.f32.mxu0 %v1237_v42 }
  0x7f   :  { %883 = vmatprep.mubr.f32.mxu1 %v1237_v42  ;;  %828 = vmatmul.mubr.f32.gmra.mxu0 %v1239_v43 }
  0x80   :  { %884 = vmatmul.mubr.f32.gmra.mxu1 %v1239_v43  ;;  %905 = vmatpush3.xpose.msra.mxu0 %v475_v41 }
  0x81   :  { %973 = vmatpush3.xpose.msra.mxu1 %v475_v41  ;;  %906 = vmatprep.subr.mxu0 %v474_v44 }
  0x82   :  { %958 = vmatprep.subr.mxu1 %v474_v44  ;;  %830 = vmatprep.mubr.f32.mxu0 %v85_v45 }
  0x83   :  { %886 = vmatprep.mubr.f32.mxu1 %v85_v45  ;;  %831 = vmatmul.mubr.f32.gmra.mxu0 %v1245_v46 }
  0x84   :  { %887 = vmatmul.mubr.f32.gmra.mxu1 %v1245_v46  ;;  %907 = vmatpush3.xpose.msra.mxu0 %v474_v44 }
  0x85   :  { %974 = vmatpush3.xpose.msra.mxu1 %v474_v44  ;;  %908 = vmatprep.subr.mxu0 %v473_v47 }
  0x86   :  { %959 = vmatprep.subr.mxu1 %v473_v47  ;;  %833 = vmatprep.mubr.f32.mxu0 %v1249_v48 }
  0x87   :  { %889 = vmatprep.mubr.f32.mxu1 %v1249_v48  ;;  %834 = vmatmul.mubr.f32.gmra.mxu0 %v1251_v49 }
  0x88   :  { %890 = vmatmul.mubr.f32.gmra.mxu1 %v1251_v49  ;;  %909 = vmatpush3.xpose.msra.mxu0 %v473_v47 }
  0x89   :  { %975 = vmatpush3.xpose.msra.mxu1 %v473_v47  ;;  %910 = vmatprep.subr.mxu0 %v472_v50 }
  0x8a   :  { %960 = vmatprep.subr.mxu1 %v472_v50  ;;  %836 = vmatprep.mubr.f32.mxu0 %v1257_v51 }
  0x8b   :  { %892 = vmatprep.mubr.f32.mxu1 %v1257_v51  ;;  %837 = vmatmul.mubr.f32.gmra.mxu0 %v1259_v52 }
  0x8c   :  { %893 = vmatmul.mubr.f32.gmra.mxu1 %v1259_v52  ;;  %911 = vmatpush3.xpose.msra.mxu0 %v472_v50 }
  0x8d   :  { %976 = vmatpush3.xpose.msra.mxu1 %v472_v50  ;;  %912 = vmatprep.subr.mxu0 %v471_v53 }
  0x8e   :  { %961 = vmatprep.subr.mxu1 %v471_v53  ;;  %839 = vmatprep.mubr.f32.mxu0 %v1265_v54 }
  0x8f   :  { %895 = vmatprep.mubr.f32.mxu1 %v1265_v54  ;;  %840 = vmatmul.mubr.f32.gmra.mxu0 %v1267_v55 }
  0x90   :  { %896 = vmatmul.mubr.f32.gmra.mxu1 %v1267_v55  ;;  %913 = vmatpush3.xpose.msra.mxu0 %v471_v53 }
  0x91   :  { %977 = vmatpush3.xpose.msra.mxu1 %v471_v53  ;;  %914 = vmatprep.subr.mxu0 %v470_v56 }
  0x92   :  { %962 = vmatprep.subr.mxu1 %v470_v56  ;;  %930 = vmatprep.mubr.f32.mxu0 %v1213_v8 }
  0x93   :  { %942 = vmatprep.mubr.f32.mxu1 %v85_v45 }
  0x94   :  { %915 = vmatpush3.xpose.msra.mxu0 %v470_v56 }
  0x95   :  { %978 = vmatpush3.xpose.msra.mxu1 %v470_v56  ;;  %916 = vmatprep.subr.mxu0 %v469_v57 }
  0x96   :  { %963 = vmatprep.subr.mxu1 %v469_v57 }
  0x98   :  { %917 = vmatpush3.xpose.msra.mxu0 %v469_v57 }
  0x99   :  { %979 = vmatpush3.xpose.msra.mxu1 %v469_v57  ;;  %918 = vmatprep.subr.mxu0 %v468_v58 }
  0x9a   :  { %964 = vmatprep.subr.mxu1 %v468_v58 }
  0x9c   :  { %919 = vmatpush3.xpose.msra.mxu0 %v468_v58 }
  0x9d   :  { %980 = vmatpush3.xpose.msra.mxu1 %v468_v58  ;;  %920 = vmatprep.subr.mxu0 %v467_v59 }
  0x9e   :  { %965 = vmatprep.subr.mxu1 %v467_v59 }
  0xa0   :  { %921 = vmatpush3.xpose.msra.mxu0 %v467_v59 }
  0xa1   :  { %981 = vmatpush3.xpose.msra.mxu1 %v467_v59  ;;  %922 = vmatprep.subr.mxu0 %v466_v60 }
  0xa2   :  { %966 = vmatprep.subr.mxu1 %v466_v60 }
  0xa4   :  { %923 = vmatpush3.xpose.msra.mxu0 %v466_v60 }
  0xa5   :  { %982 = vmatpush3.xpose.msra.mxu1 %v466_v60  ;;  %924 = vmatprep.subr.mxu0 %v465_v61 }
  0xa6   :  { %967 = vmatprep.subr.mxu1 %v465_v61 }
  0xa8   :  { %925 = vmatpush3.xpose.msra.mxu0 %v465_v61 }
  0xa9   :  { %983 = vmatpush3.xpose.msra.mxu1 %v465_v61  ;;  %926 = vmatprep.subr.mxu0 %v464_v62 }
  0xaa   :  { %968 = vmatprep.subr.mxu1 %v464_v62 }
  0xac   :  { %927 = vmatpush3.xpose.msra.mxu0 %v464_v62 }
  0xad   :  { %984 = vmatpush3.xpose.msra.mxu1 %v464_v62  ;;  %928 = vmatprep.subr.mxu0 %v463_v63 }
  0xae   :  { %969 = vmatprep.subr.mxu1 %v463_v63 }
  0xb0   :  { %929 = vmatpush3.xpose.msra.mxu0 %v463_v63 }
  0xb1   :  { %985 = vmatpush3.xpose.msra.mxu1 %v463_v63 }
  0xb3   :  { %931 = vmatmul.mubr.f32.vlgmr.msra.gmra.mxu0 %v1217_v34 }
  0xb4   :  { %943 = vmatmul.mubr.f32.vlgmr.msra.gmra.mxu1 %v1245_v46  ;;  %933 = vmatprep.mubr.f32.mxu0 %v1221_v36 }
  0xb5   :  { %945 = vmatprep.mubr.f32.mxu1 %v1249_v48 }
  0xb7   :  { %934 = vmatmul.mubr.f32.gmra.mxu0 %v1223_v37 }
  0xb8   :  { %946 = vmatmul.mubr.f32.gmra.mxu1 %v1251_v49  ;;  %936 = vmatprep.mubr.f32.mxu0 %v1229_v39 }
  0xb9   :  { %948 = vmatprep.mubr.f32.mxu1 %v1257_v51 }
  0xbb   :  { %937 = vmatmul.mubr.f32.gmra.mxu0 %v1231_v40 }
  0xbc   :  { %949 = vmatmul.mubr.f32.gmra.mxu1 %v1259_v52  ;;  %939 = vmatprep.mubr.f32.mxu0 %v1237_v42 }
  0xbd   :  { %951 = vmatprep.mubr.f32.mxu1 %v1265_v54 }
  0xbf   :  { %940 = vmatmul.mubr.f32.gmra.mxu0 %v1239_v43 }
  0xc0   :  { %952 = vmatmul.mubr.f32.gmra.mxu1 %v1267_v55 }
 0x133   :  { %v820_v0 = vpop.f32.mrf.mxu0 }
 0x134   :  { %v876_v1 = vpop.f32.mrf.mxu1  ;;  %v255_v2 = vmul.f32 0.17677669, %v820_v0 }
 0x135   :  { %448 = vst [vmem:[#allocation11 + $0x8] sm:$0xff] %v876_v1  ;;  %v175_v3 = vpop.f32.mrf.mxu0 }
 0x136   :  { %v368_v4 = vpop.f32.mrf.mxu1  ;;  %271 = vst [vmem:[#allocation10 + $0x8] sm:$0xff] %v255_v2  ;;  %v254_v5 = vmul.f32 0.17677669, %v175_v3 }
 0x137   :  { %447 = vst [vmem:[#allocation11] sm:$0xff] %v368_v4  ;;  %v823_v6 = vpop.f32.mrf.mxu0 }
 0x138   :  { %v879_v7 = vpop.f32.mrf.mxu1  ;;  %270 = vst [vmem:[#allocation10] sm:$0xff] %v254_v5  ;;  %v257_v8 = vmul.f32 0.17677669, %v823_v6 }
 0x139   :  { %450 = vst [vmem:[#allocation11 + $0x18] sm:$0xff] %v879_v7  ;;  %v185_v9 = vpop.f32.mrf.mxu0 }
 0x13a   :  { %v378_v10 = vpop.f32.mrf.mxu1  ;;  %273 = vst [vmem:[#allocation10 + $0x18] sm:$0xff] %v257_v8  ;;  %v256_v11 = vmul.f32 0.17677669, %v185_v9 }
 0x13b   :  { %449 = vst [vmem:[#allocation11 + $0x10] sm:$0xff] %v378_v10  ;;  %v826_v12 = vpop.f32.mrf.mxu0 }
 0x13c   :  { %v882_v13 = vpop.f32.mrf.mxu1  ;;  %272 = vst [vmem:[#allocation10 + $0x10] sm:$0xff] %v256_v11  ;;  %v259_v14 = vmul.f32 0.17677669, %v826_v12 }
 0x13d   :  { %452 = vst [vmem:[#allocation11 + $0x28] sm:$0xff] %v882_v13  ;;  %v195_v15 = vpop.f32.mrf.mxu0 }
 0x13e   :  { %v388_v16 = vpop.f32.mrf.mxu1  ;;  %275 = vst [vmem:[#allocation10 + $0x28] sm:$0xff] %v259_v14  ;;  %v258_v17 = vmul.f32 0.17677669, %v195_v15 }
 0x13f   :  { %451 = vst [vmem:[#allocation11 + $0x20] sm:$0xff] %v388_v16  ;;  %v829_v18 = vpop.f32.mrf.mxu0 }
 0x140   :  { %v885_v19 = vpop.f32.mrf.mxu1  ;;  %274 = vst [vmem:[#allocation10 + $0x20] sm:$0xff] %v258_v17  ;;  %v261_v20 = vmul.f32 0.17677669, %v829_v18 }
 0x141   :  { %454 = vst [vmem:[#allocation11 + $0x38] sm:$0xff] %v885_v19  ;;  %v205_v21 = vpop.f32.mrf.mxu0 }
 0x142   :  { %v398_v22 = vpop.f32.mrf.mxu1  ;;  %277 = vst [vmem:[#allocation10 + $0x38] sm:$0xff] %v261_v20  ;;  %v260_v23 = vmul.f32 0.17677669, %v205_v21 }
 0x143   :  { %453 = vst [vmem:[#allocation11 + $0x30] sm:$0xff] %v398_v22  ;;  %v832_v24 = vpop.f32.mrf.mxu0 }
 0x144   :  { %v888_v25 = vpop.f32.mrf.mxu1  ;;  %276 = vst [vmem:[#allocation10 + $0x30] sm:$0xff] %v260_v23  ;;  %v263_v26 = vmul.f32 0.17677669, %v832_v24 }
 0x145   :  { %456 = vst [vmem:[#allocation11 + $0x48] sm:$0xff] %v888_v25  ;;  %v215_v27 = vpop.f32.mrf.mxu0 }
 0x146   :  { %v408_v28 = vpop.f32.mrf.mxu1  ;;  %279 = vst [vmem:[#allocation10 + $0x48] sm:$0xff] %v263_v26  ;;  %v262_v29 = vmul.f32 0.17677669, %v215_v27 }
 0x147   :  { %455 = vst [vmem:[#allocation11 + $0x40] sm:$0xff] %v408_v28  ;;  %v835_v30 = vpop.f32.mrf.mxu0 }
 0x148   :  { %v891_v31 = vpop.f32.mrf.mxu1  ;;  %278 = vst [vmem:[#allocation10 + $0x40] sm:$0xff] %v262_v29  ;;  %v265_v32 = vmul.f32 0.17677669, %v835_v30 }
 0x149   :  { %458 = vst [vmem:[#allocation11 + $0x58] sm:$0xff] %v891_v31  ;;  %v225_v33 = vpop.f32.mrf.mxu0 }
 0x14a   :  { %v418_v34 = vpop.f32.mrf.mxu1  ;;  %281 = vst [vmem:[#allocation10 + $0x58] sm:$0xff] %v265_v32  ;;  %v264_v35 = vmul.f32 0.17677669, %v225_v33 }
 0x14b   :  { %457 = vst [vmem:[#allocation11 + $0x50] sm:$0xff] %v418_v34  ;;  %v838_v36 = vpop.f32.mrf.mxu0 }
 0x14c   :  { %v894_v37 = vpop.f32.mrf.mxu1  ;;  %280 = vst [vmem:[#allocation10 + $0x50] sm:$0xff] %v264_v35  ;;  %v267_v38 = vmul.f32 0.17677669, %v838_v36 }
 0x14d   :  { %460 = vst [vmem:[#allocation11 + $0x68] sm:$0xff] %v894_v37  ;;  %v235_v39 = vpop.f32.mrf.mxu0 }
 0x14e   :  { %v428_v40 = vpop.f32.mrf.mxu1  ;;  %283 = vst [vmem:[#allocation10 + $0x68] sm:$0xff] %v267_v38  ;;  %v266_v41 = vmul.f32 0.17677669, %v235_v39 }
 0x14f   :  { %459 = vst [vmem:[#allocation11 + $0x60] sm:$0xff] %v428_v40  ;;  %v841_v42 = vpop.f32.mrf.mxu0 }
 0x150   :  { %v897_v43 = vpop.f32.mrf.mxu1  ;;  %282 = vst [vmem:[#allocation10 + $0x60] sm:$0xff] %v266_v41  ;;  %v269_v44 = vmul.f32 0.17677669, %v841_v42 }
 0x151   :  { %462 = vst [vmem:[#allocation11 + $0x78] sm:$0xff] %v897_v43  ;;  %v245_v45 = vpop.f32.mrf.mxu0 }
 0x152   :  { %v438_v46 = vpop.f32.mrf.mxu1  ;;  %285 = vst [vmem:[#allocation10 + $0x78] sm:$0xff] %v269_v44  ;;  %v268_v47 = vmul.f32 0.17677669, %v245_v45 }
 0x153   :  { %461 = vst [vmem:[#allocation11 + $0x70] sm:$0xff] %v438_v46 }
 0x154   :  { %1086 = shalt.err (!%p1083_p10)
}
 0x155   :  { %663 = dma.vmem_to_hbm [thread:$0]  %s658_s3, 2048, %s1311_s5, [#allocation12], %s1147_s26, %s1147_s26, %s1148_s27   ;;  %284 = vst [vmem:[#allocation10 + $0x70] sm:$0xff] %v268_v47 }
 0x156   :  { %s1095_s22 = scalar_lea.vmem %s646_s18, 2048  ;;  %p1100_p12 = scmp.lt.s32.totalorder %s646_s18, %s646_s18 }
 0x157   :  { %p1096_p11 = scmp.ne.s32.totalorder %s646_s18, %s1095_s22  ;;  %p1101_p13 = scmp.lt.s32.totalorder %s1095_s22, %s1095_s22 }
 0x159   :  { %p1102_p0 = por %p1101_p13, %p1100_p12 }
 0x15b   :  { %p1103_p1 = pnand %p1102_p0, %p1096_p11 }
 0x15d   :  { %1106 = shalt.err (!%p1103_p1)
}
 0x15e   :  { %651 = dma.vmem_to_hbm [thread:$0]  %s646_s18, 2048, %s1310_s4, [#allocation4], %s1147_s26, %s1147_s26, %s1148_s27  }
 0x15f   :  { %s1153_s4 = smov [#allocation13]  }
 0x160   :  { %s669_s5 = sshll.u32 %s1153_s4, 4  ;;  %s670_s5 = int_to_ptr.vmem [resolvable:$true] %s669_s5 }
 0x161   :  { %s1115_s25 = scalar_lea.vmem %s670_s5, 2048  ;;  %p1120_p3 = scmp.lt.s32.totalorder %s670_s5, %s670_s5 }
 0x162   :  { %p1116_p2 = scmp.ne.s32.totalorder %s670_s5, %s1115_s25  ;;  %p1121_p4 = scmp.lt.s32.totalorder %s1115_s25, %s1115_s25 }
 0x164   :  { %p1122_p5 = por %p1121_p4, %p1120_p3 }
 0x166   :  { %p1123_p6 = pnand %p1122_p5, %p1116_p2 }
 0x173   :  { %v932_v48 = vpop.f32.mrf.mxu0 }
 0x174   :  { %v944_v49 = vpop.f32.mrf.mxu1  ;;  %625 = vst [vmem:[#allocation13 + $0x8] sm:$0xff] %v932_v48 }
 0x175   :  { %633 = vst [vmem:[#allocation13 + $0x48] sm:$0xff] %v944_v49  ;;  %v545_v50 = vpop.f32.mrf.mxu0 }
 0x176   :  { %v585_v51 = vpop.f32.mrf.mxu1  ;;  %624 = vst [vmem:[#allocation13] sm:$0xff] %v545_v50 }
 0x177   :  { %632 = vst [vmem:[#allocation13 + $0x40] sm:$0xff] %v585_v51  ;;  %v935_v52 = vpop.f32.mrf.mxu0 }
 0x178   :  { %v947_v53 = vpop.f32.mrf.mxu1  ;;  %627 = vst [vmem:[#allocation13 + $0x18] sm:$0xff] %v935_v52 }
 0x179   :  { %635 = vst [vmem:[#allocation13 + $0x58] sm:$0xff] %v947_v53  ;;  %v555_v54 = vpop.f32.mrf.mxu0 }
 0x17a   :  { %v595_v55 = vpop.f32.mrf.mxu1  ;;  %626 = vst [vmem:[#allocation13 + $0x10] sm:$0xff] %v555_v54 }
 0x17b   :  { %634 = vst [vmem:[#allocation13 + $0x50] sm:$0xff] %v595_v55  ;;  %v938_v56 = vpop.f32.mrf.mxu0 }
 0x17c   :  { %v950_v57 = vpop.f32.mrf.mxu1  ;;  %629 = vst [vmem:[#allocation13 + $0x28] sm:$0xff] %v938_v56 }
 0x17d   :  { %637 = vst [vmem:[#allocation13 + $0x68] sm:$0xff] %v950_v57  ;;  %v565_v58 = vpop.f32.mrf.mxu0 }
 0x17e   :  { %v605_v59 = vpop.f32.mrf.mxu1  ;;  %628 = vst [vmem:[#allocation13 + $0x20] sm:$0xff] %v565_v58 }
 0x17f   :  { %636 = vst [vmem:[#allocation13 + $0x60] sm:$0xff] %v605_v59  ;;  %v941_v60 = vpop.f32.mrf.mxu0 }
 0x180   :  { %v953_v61 = vpop.f32.mrf.mxu1  ;;  %631 = vst [vmem:[#allocation13 + $0x38] sm:$0xff] %v941_v60 }
 0x181   :  { %639 = vst [vmem:[#allocation13 + $0x78] sm:$0xff] %v953_v61  ;;  %v575_v62 = vpop.f32.mrf.mxu0 }
 0x182   :  { %v615_v63 = vpop.f32.mrf.mxu1  ;;  %630 = vst [vmem:[#allocation13 + $0x30] sm:$0xff] %v575_v62 }
 0x183   :  { %638 = vst [vmem:[#allocation13 + $0x70] sm:$0xff] %v615_v63 }
 0x184   :  { %1126 = shalt.err (!%p1123_p6)
}
 0x185   :  { %675 = dma.vmem_to_hbm [thread:$0]  %s670_s5, 2048, %s1312_s6, [#allocation12], %s1147_s26, %s1147_s26, %s1148_s27  }
 0x186   :  { %1141 = dma.done.wait [#allocation4], 2048  }
 0x187   :  { %1142 = vsyncadd [#allocation4], 4294965248 }
 0x188   :  { %1143 = dma.done.wait [#allocation12], 4096  }
 0x189   :  { %1144 = vsyncadd [#allocation12], 4294963200 }
 0x18a   :  { %685 = vsyncpa [#allocation3], 1 }
 0x18b   :  { %686 = vsyncpa [#allocation6], 1 }
 0x18c   :  { %687 = vsyncpa [#allocation9], 1 }
 0x18d   :  { %688 = vsyncpa [#allocation4], 1 }
 0x18e   :  { %689 = vsyncpa [#allocation12], 1 }

</bundles_post_ra>
